<compile_context>
chip_gen: v7x
topology: tpu7x:2x2x1
jax: 0.10.0
libtpu: 0.0.40
codegen_flags: <defaults>
</compile_context>

<pallas_src>
import functools

import jax
import jax.numpy as jnp
from jax import lax
from jax.experimental import pallas as pl
from jax.experimental.pallas import tpu as pltpu

_LANE = 128


def _round_up(x, m):
    return ((x + m - 1) // m) * m


# ---------------------------------------------------------------------------
# Pallas kernel: shared supervised-contrastive loss core.
#   use_sq_dist=False -> WeaklyConLoss similarity  :  <f_i, f_j> / T          (MXU)
#   use_sq_dist=True  -> DenseContrastiveLoss      : -||f_i - f_j||^2 / T     (Gram trick)
#
# Grid axis 0 tiles the feature dimension K; the Gram matrix and squared row norms are
# accumulated in VMEM scratch, and the softmax/loss epilogue runs on the last K step.
# ---------------------------------------------------------------------------
def _contrastive_loss_kernel(feat_ref, *rest, n_valid, temperature,
                             base_temperature, use_sq_dist, log_eps,
                             has_external_mask, mxu_dtype):
    if has_external_mask:
        mask_ref, out_ref, gram_acc, sq_acc = rest
    else:
        lab_col_ref, lab_row_ref, out_ref, gram_acc, sq_acc = rest

    k_idx = pl.program_id(0)

    @pl.when(k_idx == 0)
    def _init():
        gram_acc[...] = jnp.zeros_like(gram_acc)
        sq_acc[...] = jnp.zeros_like(sq_acc)

    # ---- K-tile accumulation (pipelined HBM->VMEM feature DMA overlaps the MXU) ----
    f = feat_ref[...]                                    # (N_pad, tk) f32 tile
    fm = f.astype(mxu_dtype)                             # bf16 here for max MXU rate in prod
    gram_acc[...] += lax.dot_general(fm, fm, (((1,), (1,)), ((), ())),
                                     preferred_element_type=jnp.float32)
    if use_sq_dist:
        # Row norms accumulated directly (O(N*K) VPU work) instead of two N^2 reductions.
        sq_acc[...] += jnp.sum(f * f, axis=1, keepdims=True)

    # ---- epilogue: masks rebuilt in-kernel, numerically-stable softmax, row mean ----
    @pl.when(k_idx == pl.num_programs(0) - 1)
    def _epilogue():
        np_ = gram_acc.shape[0]
        gram = gram_acc[...]

        row = lax.broadcasted_iota(jnp.int32, (np_, np_), 0)
        col = lax.broadcasted_iota(jnp.int32, (np_, np_), 1)
        eye = row == col
        valid_col = col < n_valid
        valid_row = row < n_valid

        inv_t = 1.0 / float(temperature)

        if use_sq_dist:
            # ||f_i - f_j||^2 = ||f_i||^2 + ||f_j||^2 - 2 <f_i, f_j>
            sq_c = sq_acc[...]                                      # (N_pad, 1)
            diag = jnp.where(eye, gram, 0.0)
            sq_r = jnp.sum(diag, axis=0, keepdims=True)             # (1, N_pad) from Gram diag
            dist = jnp.maximum(sq_c + sq_r - 2.0 * gram, 0.0)
            dist = jnp.where(eye, 0.0, dist)                        # exact zero on the diagonal
            # logits = -dist/T <= 0 with an exact 0 on the diagonal, so the reference's
            # row-max is identically 0: skip the O(N^2) max reduction + subtract.
            logits = dist * (-inv_t)
        else:
            logits_raw = gram * inv_t
            masked = jnp.where(valid_col, logits_raw, -1e30)        # exclude padded columns
            logits_max = jnp.max(masked, axis=1, keepdims=True)
            logits = logits_raw - logits_max

        keep = jnp.logical_and(valid_col, jnp.logical_not(eye))     # no self, no padding
        logits_mask = keep.astype(jnp.float32)
        valid_row_f = valid_row.astype(jnp.float32)

        if has_external_mask:
            pos = mask_ref[...].astype(jnp.float32)
        else:
            # mask[i,j] = (label[i] == label[j]); identity mask <=> labels = arange(bsz)
            pos = (lab_col_ref[...] == lab_row_ref[...]).astype(jnp.float32)
        m = pos * logits_mask * valid_row_f                         # padded rows -> loss 0

        exp_logits = jnp.exp(logits) * logits_mask
        denom = jnp.sum(exp_logits, axis=1, keepdims=True) + log_eps
        log_prob = logits - jnp.log(denom)

        mask_pos = jnp.sum(m, axis=1, keepdims=True)
        mask_pos = jnp.where(mask_pos < 1e-6, 1.0, mask_pos)
        mean_log_prob_pos = jnp.sum(m * log_prob, axis=1, keepdims=True) / mask_pos
        loss_vec = (-(float(temperature) / float(base_temperature))) * mean_log_prob_pos

        # loss.view(anchor_count, batch_size).mean() == mean over the N valid rows
        out_ref[...] = jnp.sum(loss_vec, axis=0, keepdims=True) * (1.0 / float(n_valid))


def _vmem_limit_bytes(n_pad, tk):
    need = (2 * n_pad * tk * 4            # double-buffered feature tiles
            + n_pad * n_pad * 4           # Gram accumulator scratch
            + 8 * n_pad * n_pad * 4       # headroom for N×N epilogue temporaries
            + (2 << 20))                  # misc
    cap = 64 << 20
    try:
        info = pltpu.get_tpu_info()
        cap = int(getattr(info, "vmem_capacity_bytes", cap))
    except Exception:
        pass
    return int(min(max(need, 32 << 20), int(cap * 0.9)))


def _run_loss_kernel(feat2d, labels_vec=None, pos_mask=None, *, temperature,
                     base_temperature, use_sq_dist, log_eps,
                     mxu_dtype=jnp.float32, max_tk=512):
    n, k = feat2d.shape
    # Lane-dense N×N work: pad N to a multiple of 128; padded rows/cols are masked out.
    n_pad = _round_up(max(n, _LANE), _LANE)
    tk = min(max_tk, _round_up(k, _LANE))
    k_pad = _round_up(k, tk)
    num_k = k_pad // tk

    # TODO(synk): for very large N (n_views*bsz >> ~2k) the N×N epilogue should be
    # row-tiled flash-style (online softmax) so it fits v7x's 64 MiB VMEM and exposes a
    # "parallel" grid axis for its two TensorCores; single-tile epilogue kept here.
    f = jnp.pad(feat2d.astype(jnp.float32), ((0, n_pad - n), (0, k_pad - k)))

    has_external_mask = pos_mask is not None
    if has_external_mask:
        pm = jnp.pad(jnp.asarray(pos_mask, jnp.float32),
                     ((0, n_pad - n), (0, n_pad - n)))
        extra_inputs = (pm,)
        extra_specs = [pl.BlockSpec((n_pad, n_pad), lambda kk: (0, 0))]
    else:
        lab = jnp.pad(jnp.asarray(labels_vec, jnp.int32), (0, n_pad - n))
        extra_inputs = (lab.reshape(n_pad, 1), lab.reshape(1, n_pad))
        extra_specs = [pl.BlockSpec((n_pad, 1), lambda kk: (0, 0)),
                       pl.BlockSpec((1, n_pad), lambda kk: (0, 0))]

    kernel = functools.partial(
        _contrastive_loss_kernel,
        n_valid=int(n),
        temperature=float(temperature),
        base_temperature=float(base_temperature),
        use_sq_dist=use_sq_dist,
        log_eps=float(log_eps),
        has_external_mask=has_external_mask,
        mxu_dtype=mxu_dtype,
    )

    out = pl.pallas_call(
        kernel,
        out_shape=jax.ShapeDtypeStruct((1, 1), jnp.float32),
        grid_spec=pltpu.PrefetchScalarGridSpec(
            num_scalar_prefetch=0,
            grid=(num_k,),
            in_specs=[pl.BlockSpec((n_pad, tk), lambda kk: (0, kk))] + extra_specs,
            out_specs=pl.BlockSpec((1, 1), lambda kk: (0, 0)),
            scratch_shapes=[pltpu.VMEM((n_pad, n_pad), jnp.float32),   # Gram accumulator
                            pltpu.VMEM((n_pad, 1), jnp.float32)],      # squared row norms
        ),
        compiler_params=pltpu.CompilerParams(
            dimension_semantics=("arbitrary",),                        # K is a reduction axis
            vmem_limit_bytes=_vmem_limit_bytes(n_pad, tk)),
    )(f, *extra_inputs)
    return out[0, 0]


# ---------------------------------------------------------------------------
# Glue (plain JAX): label-vector / mask construction, view-major concat, flattening.
# ---------------------------------------------------------------------------
def _label_vector(batch_size, n_views, labels=None, mask=None):
    """Return (labels_vec, pos_mask); exactly one is not None."""
    if labels is not None and mask is not None:
        raise ValueError('Cannot define both `labels` and `mask`')
    if mask is not None:
        base = jnp.asarray(mask, jnp.float32)
        return None, jnp.tile(base, (n_views, n_views))
    if labels is not None:
        labels = jnp.asarray(labels).reshape(-1)
        if labels.shape[0] != batch_size:
            raise ValueError('Num of labels does not match num of features')
        return jnp.tile(labels.astype(jnp.int32), n_views), None
    # no labels / no mask -> identity mask == per-sample "labels" 0..bsz-1
    return jnp.tile(jnp.arange(batch_size, dtype=jnp.int32), n_views), None


def combined_contrastive_loss(global_features, dense_features, labels=None, mask=None,
                              global_temperature=0.1, dense_temperature=0.1,
                              lambda_weight=0.5, mxu_dtype=jnp.float32):
    # ---- global branch (WeaklyConLoss, contrast_mode='all') ----
    gf = jnp.asarray(global_features)
    if gf.ndim < 3:
        raise ValueError('`features` needs to be [bsz, n_views, ...]')
    if gf.ndim > 3:
        gf = gf.reshape(gf.shape[0], gf.shape[1], -1)
    bsz, n_views_g, d = gf.shape
    labels_vec_g, pos_mask_g = _label_vector(bsz, n_views_g, labels, mask)
    # torch.cat(torch.unbind(features, dim=1), dim=0)  == view-major concat
    contrast_g = jnp.transpose(gf, (1, 0, 2)).reshape(n_views_g * bsz, d)
    global_loss = _run_loss_kernel(
        contrast_g, labels_vec=labels_vec_g, pos_mask=pos_mask_g,
        temperature=global_temperature, base_temperature=0.07,
        use_sq_dist=False, log_eps=0.0, mxu_dtype=mxu_dtype)

    # ---- dense branch (DenseContrastiveLoss; labels/mask NOT forwarded -> identity mask) ----
    df = jnp.asarray(dense_features)
    df = df.reshape(df.shape[0], df.shape[1], df.shape[2], -1)       # (bsz, n_views, C, H*W)
    bsz_d, n_views_d, c, hw = df.shape
    labels_vec_d, _ = _label_vector(bsz_d, n_views_d, None, None)
    contrast_d = jnp.transpose(df, (1, 0, 2, 3)).reshape(n_views_d * bsz_d, c * hw)
    dense_loss = _run_loss_kernel(
        contrast_d, labels_vec=labels_vec_d, pos_mask=None,
        temperature=dense_temperature, base_temperature=0.07,
        use_sq_dist=True, log_eps=1e-10, mxu_dtype=mxu_dtype)

    combined = (1.0 - lambda_weight) * global_loss + lambda_weight * dense_loss
    return combined, global_loss, dense_loss


# ---------------------------------------------------------------------------
# Pure-JAX reference (line-by-line port of the PyTorch module) for validation.
# ---------------------------------------------------------------------------
def _ref_weakly(features, labels=None, mask=None, temperature=0.1, base_temperature=0.07):
    if features.ndim > 3:
        features = features.reshape(features.shape[0], features.shape[1], -1)
    bsz, n_views = features.shape[0], features.shape[1]
    if labels is not None:
        lab = labels.reshape(-1, 1)
        mask = (lab == lab.T).astype(jnp.float32)
    elif mask is None:
        mask = jnp.eye(bsz, dtype=jnp.float32)
    contrast = jnp.concatenate([features[:, v] for v in range(n_views)], axis=0)
    logits_raw = jnp.matmul(contrast, contrast.T,
                            precision=lax.Precision.HIGHEST) / temperature
    logits = logits_raw - jnp.max(logits_raw, axis=1, keepdims=True)
    mask = jnp.tile(mask, (n_views, n_views))
    n = mask.shape[0]
    logits_mask = 1.0 - jnp.eye(n, dtype=jnp.float32)
    mask = mask * logits_mask
    exp_logits = jnp.exp(logits) * logits_mask
    log_prob = logits - jnp.log(jnp.sum(exp_logits, axis=1, keepdims=True))
    mask_pos = jnp.sum(mask, axis=1)
    mask_pos = jnp.where(mask_pos < 1e-6, 1.0, mask_pos)
    mean_lp = jnp.sum(mask * log_prob, axis=1) / mask_pos
    return jnp.mean(-(temperature / base_temperature) * mean_lp)


def _ref_dense(features, temperature=0.1, base_temperature=0.07):
    features = features.reshape(features.shape[0], features.shape[1], features.shape[2], -1)
    bsz, n_views = features.shape[0], features.shape[1]
    mask = jnp.eye(bsz, dtype=jnp.float32)
    contrast = jnp.concatenate([features[:, v] for v in range(n_views)], axis=0)
    diff = contrast[:, None] - contrast[None, :]
    dist = jnp.sum(diff * diff, axis=(2, 3))
    logits_raw = -dist / temperature
    logits = logits_raw - jnp.max(logits_raw, axis=1, keepdims=True)
    mask = jnp.tile(mask, (n_views, n_views))
    n = mask.shape[0]
    logits_mask = 1.0 - jnp.eye(n, dtype=jnp.float32)
    mask = mask * logits_mask
    exp_logits = jnp.exp(logits) * logits_mask
    log_prob = logits - jnp.log(jnp.sum(exp_logits, axis=1, keepdims=True) + 1e-10)
    mask_pos = jnp.sum(mask, axis=1)
    mask_pos = jnp.where(mask_pos < 1e-6, 1.0, mask_pos)
    mean_lp = jnp.sum(mask * log_prob, axis=1) / mask_pos
    return jnp.mean(-(temperature / base_temperature) * mean_lp)


if __name__ == "__main__":
    key = jax.random.PRNGKey(0)
    k1, k2, k3 = jax.random.split(key, 3)

    bsz, n_views, hidden = 4, 2, 32
    C, H, W = 4, 16, 16          # dense K = C*H*W = 1024 -> exercises the 2-step K tiling

    # global features: unit-normalized per (sample, view), as typical for contrastive heads
    gfeat = jax.random.normal(k1, (bsz, n_views, hidden), dtype=jnp.float32)
    gfeat = gfeat / jnp.linalg.norm(gfeat, axis=-1, keepdims=True)
    # dense features: modest scale so squared distances stay in a sane range
    dfeat = 0.05 * jax.random.normal(k2, (bsz, n_views, C, H, W), dtype=jnp.float32)
    labels = jax.random.randint(k3, (bsz,), 0, 2)

    combined, g_loss, d_loss = combined_contrastive_loss(
        gfeat, dfeat, labels=labels,
        global_temperature=0.1, dense_temperature=0.1, lambda_weight=0.5)
    jax.block_until_ready((combined, g_loss, d_loss))

    # sanity check against pure-JAX port of the PyTorch module
    ref_g = _ref_weakly(gfeat, labels=labels, temperature=0.1, base_temperature=0.07)
    ref_d = _ref_dense(dfeat, temperature=0.1, base_temperature=0.07)
    ref_c = 0.5 * ref_g + 0.5 * ref_d
    assert jnp.allclose(g_loss, ref_g, rtol=2e-3, atol=2e-3), (g_loss, ref_g)
    assert jnp.allclose(d_loss, ref_d, rtol=2e-3, atol=2e-3), (d_loss, ref_d)
    assert jnp.allclose(combined, ref_c, rtol=2e-3, atol=2e-3), (combined, ref_c)

    print("KERNEL_OK")
</pallas_src>

<mosaic_0001>
module attributes {stable_mosaic.version = 11 : i64} {
  func.func @_contrastive_loss_kernel(%arg0: i32, %arg1: memref<128x128xf32, #tpu.memory_space<vmem>>, %arg2: memref<128x1xi32, #tpu.memory_space<vmem>>, %arg3: memref<1x128xi32, #tpu.memory_space<vmem>>, %arg4: memref<1x1xf32, #tpu.memory_space<vmem>>, %arg5: memref<128x128xf32, #tpu.memory_space<vmem>>, %arg6: memref<128x1xf32, #tpu.memory_space<vmem>>) attributes {dimension_semantics = [#tpu.dimension_semantics<arbitrary>], iteration_bounds = array<i64: 1>, scalar_prefetch = 0 : i64, scratch_operands = 2 : i64, tpu.core_type = #tpu.core_type<tc>, window_params = [{transform_indices = @transform_0, window_bounds = array<i64: 128, 128>}, {pipeline_mode = #tpu.pipeline_mode<synchronous>, transform_indices = @transform_1, window_bounds = array<i64: 128, 1>}, {pipeline_mode = #tpu.pipeline_mode<synchronous>, transform_indices = @transform_2, window_bounds = array<i64: 1, 128>}, {pipeline_mode = #tpu.pipeline_mode<synchronous>, transform_indices = @transform_3, window_bounds = array<i64: 1, 1>}]} {
    %c0_i32 = arith.constant 0 : i32
    %0 = arith.cmpi eq, %arg0, %c0_i32 : i32
    %1 = arith.extui %0 : i1 to i32
    %c0_i32_0 = arith.constant 0 : i32
    %2 = arith.cmpi ne, %1, %c0_i32_0 : i32
    scf.if %2 {
      %cst_8 = arith.constant 0.000000e+00 : f32
      %11 = vector.broadcast %cst_8 : f32 to vector<128x128xf32>
      %c0_9 = arith.constant 0 : index
      %c0_10 = arith.constant 0 : index
      %12 = vector.load %arg5[%c0_9, %c0_10] : memref<128x128xf32, #tpu.memory_space<vmem>>, vector<128x128xf32>
      tpu.vector_store %arg5[%c0_9, %c0_10], %11 {strides = array<i32>} : memref<128x128xf32, #tpu.memory_space<vmem>>, vector<128x128xf32>,
      %cst_11 = arith.constant 0.000000e+00 : f32
      %13 = vector.broadcast %cst_11 : f32 to vector<128x1xf32>
      %c0_12 = arith.constant 0 : index
      %c0_13 = arith.constant 0 : index
      %14 = vector.load %arg6[%c0_12, %c0_13] : memref<128x1xf32, #tpu.memory_space<vmem>>, vector<128x1xf32>
      tpu.vector_store %arg6[%c0_12, %c0_13], %13 {strides = array<i32>} : memref<128x1xf32, #tpu.memory_space<vmem>>, vector<128x1xf32>,
    } else {
    }
    %c0 = arith.constant 0 : index
    %c0_1 = arith.constant 0 : index
    %3 = vector.load %arg1[%c0, %c0_1] : memref<128x128xf32, #tpu.memory_space<vmem>>, vector<128x128xf32>
    %c0_2 = arith.constant 0 : index
    %c0_3 = arith.constant 0 : index
    %4 = vector.load %arg5[%c0_2, %c0_3] : memref<128x128xf32, #tpu.memory_space<vmem>>, vector<128x128xf32>
    %cst = arith.constant dense<0.000000e+00> : vector<128x128xf32>
    %5 = tpu.matmul %3, %3, %cst {dimension_numbers = #tpu.dot_dimension_numbers<[1], [1], [0], [0], [0, 0, 1, 0], [], []>} : vector<128x128xf32>, vector<128x128xf32>, vector<128x128xf32> -> vector<128x128xf32>
    %6 = arith.addf %4, %5 : vector<128x128xf32>
    %c0_4 = arith.constant 0 : index
    %c0_5 = arith.constant 0 : index
    %7 = vector.load %arg5[%c0_4, %c0_5] : memref<128x128xf32, #tpu.memory_space<vmem>>, vector<128x128xf32>
    tpu.vector_store %arg5[%c0_4, %c0_5], %6 {strides = array<i32>} : memref<128x128xf32, #tpu.memory_space<vmem>>, vector<128x128xf32>,
    %c0_i32_6 = arith.constant 0 : i32
    %8 = arith.cmpi eq, %arg0, %c0_i32_6 : i32
    %9 = arith.extui %8 : i1 to i32
    %c0_i32_7 = arith.constant 0 : i32
    %10 = arith.cmpi ne, %9, %c0_i32_7 : i32
    scf.if %10 {
      %c0_8 = arith.constant 0 : index
      %c0_9 = arith.constant 0 : index
      %11 = vector.load %arg5[%c0_8, %c0_9] : memref<128x128xf32, #tpu.memory_space<vmem>>, vector<128x128xf32>
      %12 = tpu.iota {dimensions = array<i32: 0>} : vector<128x128xi32>
      %13 = tpu.iota {dimensions = array<i32: 1>} : vector<128x128xi32>
      %14 = arith.cmpi eq, %12, %13 : vector<128x128xi32>
      %c8_i32 = arith.constant 8 : i32
      %15 = vector.broadcast %c8_i32 : i32 to vector<128x128xi32>
      %16 = arith.cmpi slt, %13, %15 : vector<128x128xi32>
      %c8_i32_10 = arith.constant 8 : i32
      %17 = vector.broadcast %c8_i32_10 : i32 to vector<128x128xi32>
      %18 = arith.cmpi slt, %12, %17 : vector<128x128xi32>
      %cst_11 = arith.constant 1.000000e+01 : f32
      %19 = vector.broadcast %cst_11 : f32 to vector<128x128xf32>
      %20 = arith.mulf %11, %19 : vector<128x128xf32>
      %cst_12 = arith.constant -1.000000e+30 : f32
      %21 = vector.broadcast %cst_12 : f32 to vector<128x128xf32>
      %22 = arith.select %16, %20, %21 : vector<128x128xi1>, vector<128x128xf32>
      %cst_13 = arith.constant dense<0xFF800000> : vector<128xf32>
      %23 = vector.multi_reduction <maximumf>, %22, %cst_13 [1] : vector<128x128xf32> to vector<128xf32>
      %24 = vector.shape_cast %23 : vector<128xf32> to vector<128x1xf32>
      %25 = vector.broadcast %24 : vector<128x1xf32> to vector<128x128xf32>
      %26 = arith.subf %20, %25 : vector<128x128xf32>
      %cst_14 = arith.constant dense<true> : vector<128x128xi1>
      %27 = arith.xori %14, %cst_14 : vector<128x128xi1>
      %28 = arith.andi %16, %27 : vector<128x128xi1>
      %29 = arith.extui %28 : vector<128x128xi1> to vector<128x128xi32>
      %30 = arith.sitofp %29 : vector<128x128xi32> to vector<128x128xf32>
      %31 = arith.extui %18 : vector<128x128xi1> to vector<128x128xi32>
      %32 = arith.sitofp %31 : vector<128x128xi32> to vector<128x128xf32>
      %c0_15 = arith.constant 0 : index
      %c0_16 = arith.constant 0 : index
      %33 = vector.load %arg2[%c0_15, %c0_16] : memref<128x1xi32, #tpu.memory_space<vmem>>, vector<128x1xi32>
      %c0_17 = arith.constant 0 : index
      %c0_18 = arith.constant 0 : index
      %34 = vector.load %arg3[%c0_17, %c0_18] : memref<1x128xi32, #tpu.memory_space<vmem>>, vector<1x128xi32>
      %35 = vector.broadcast %33 : vector<128x1xi32> to vector<128x128xi32>
      %36 = vector.broadcast %34 : vector<1x128xi32> to vector<128x128xi32>
      %37 = arith.cmpi eq, %35, %36 : vector<128x128xi32>
      %38 = arith.extui %37 : vector<128x128xi1> to vector<128x128xi32>
      %39 = arith.sitofp %38 : vector<128x128xi32> to vector<128x128xf32>
      %40 = arith.mulf %39, %30 : vector<128x128xf32>
      %41 = arith.mulf %40, %32 : vector<128x128xf32>
      %42 = math.exp %26 : vector<128x128xf32>
      %43 = arith.mulf %42, %30 : vector<128x128xf32>
      %cst_19 = arith.constant dense<0.000000e+00> : vector<128xf32>
      %44 = vector.multi_reduction <add>, %43, %cst_19 [1] : vector<128x128xf32> to vector<128xf32>
      %45 = vector.shape_cast %44 : vector<128xf32> to vector<128x1xf32>
      %cst_20 = arith.constant 0.000000e+00 : f32
      %46 = vector.broadcast %cst_20 : f32 to vector<128x1xf32>
      %47 = arith.addf %45, %46 : vector<128x1xf32>
      %48 = math.log %47 : vector<128x1xf32>
      %49 = vector.broadcast %48 : vector<128x1xf32> to vector<128x128xf32>
      %50 = arith.subf %26, %49 : vector<128x128xf32>
      %cst_21 = arith.constant dense<0.000000e+00> : vector<128xf32>
      %51 = vector.multi_reduction <add>, %41, %cst_21 [1] : vector<128x128xf32> to vector<128xf32>
      %52 = vector.shape_cast %51 : vector<128xf32> to vector<128x1xf32>
      %cst_22 = arith.constant 9.99999997E-7 : f32
      %53 = vector.broadcast %cst_22 : f32 to vector<128x1xf32>
      %54 = arith.cmpf olt, %52, %53 : vector<128x1xf32>
      %cst_23 = arith.constant 1.000000e+00 : f32
      %55 = vector.broadcast %cst_23 : f32 to vector<128x1xf32>
      %56 = arith.select %54, %55, %52 : vector<128x1xi1>, vector<128x1xf32>
      %57 = arith.mulf %41, %50 : vector<128x128xf32>
      %cst_24 = arith.constant dense<0.000000e+00> : vector<128xf32>
      %58 = vector.multi_reduction <add>, %57, %cst_24 [1] : vector<128x128xf32> to vector<128xf32>
      %59 = vector.shape_cast %58 : vector<128xf32> to vector<128x1xf32>
      %60 = arith.divf %59, %56 : vector<128x1xf32>
      %cst_25 = arith.constant -1.42857146 : f32
      %61 = vector.broadcast %cst_25 : f32 to vector<128x1xf32>
      %62 = arith.mulf %61, %60 : vector<128x1xf32>
      %cst_26 = arith.constant dense<0.000000e+00> : vector<1xf32>
      %63 = vector.multi_reduction <add>, %62, %cst_26 [0] : vector<128x1xf32> to vector<1xf32>
      %64 = vector.shape_cast %63 : vector<1xf32> to vector<1x1xf32>
      %cst_27 = arith.constant 1.250000e-01 : f32
      %65 = vector.broadcast %cst_27 : f32 to vector<1x1xf32>
      %66 = arith.mulf %64, %65 : vector<1x1xf32>
      %c0_28 = arith.constant 0 : index
      %c0_29 = arith.constant 0 : index
      %67 = vector.load %arg4[%c0_28, %c0_29] : memref<1x1xf32, #tpu.memory_space<vmem>>, vector<1x1xf32>
      tpu.vector_store %arg4[%c0_28, %c0_29], %66 {strides = array<i32>} : memref<1x1xf32, #tpu.memory_space<vmem>>, vector<1x1xf32>,
    } else {
    }
    return
  }
  func.func @transform_0(%arg0: i32) -> (i32, i32) {
    %c0_i32 = arith.constant 0 : i32
    %c0_i32_0 = arith.constant 0 : i32
    return %c0_i32, %arg0 : i32, i32
  }
  func.func @transform_1(%arg0: i32) -> (i32, i32) {
    %c0_i32 = arith.constant 0 : i32
    %c0_i32_0 = arith.constant 0 : i32
    %c0_i32_1 = arith.constant 0 : i32
    return %c0_i32, %c0_i32_0 : i32, i32
  }
  func.func @transform_2(%arg0: i32) -> (i32, i32) {
    %c0_i32 = arith.constant 0 : i32
    %c0_i32_0 = arith.constant 0 : i32
    %c0_i32_1 = arith.constant 0 : i32
    return %c0_i32, %c0_i32_0 : i32, i32
  }
  func.func @transform_3(%arg0: i32) -> (i32, i32) {
    %c0_i32 = arith.constant 0 : i32
    %c0_i32_0 = arith.constant 0 : i32
    %c0_i32_1 = arith.constant 0 : i32
    return %c0_i32, %c0_i32_0 : i32, i32
  }
}

</mosaic_0001>

<bundles_post_ra>
// kernel: tpu_custom_call.1
= control target key start
LH: loop header
LB: loop body
LE: loop exit
PB: predicated region body
PF: predicated region fallthrough
CT: control target
= control target key end

     0   :  { %v1294_v5 = vmov 0   ;;  %s1993_s0 = inlined_call_operand.vmem [shape: f32[128,128], index: 0, kind: input, shape index: {}]   ;;  %s1994_s1 = inlined_call_operand.vmem [shape: s32[128,1], index: 1, kind: input, shape index: {}]   ;;  %s1995_s2 = inlined_call_operand.vmem [shape: s32[1,128], index: 2, kind: input, shape index: {}]   ;;  %s1996_s3 = inlined_call_operand.hbm [shape: f32[1,1], index: 3, kind: output, shape index: {}]  }
   0x1   :  { %v52_v0 = vld [vmem:[%s1993_s0] sm:$0xff]  ;;  %v1324_v1 = vld [vmem:[%s1993_s0 + $0x8] sm:$0xff]  ;;  %v1329_v2 = vld [vmem:[%s1993_s0 + $0x10] sm:$0xff]  ;;  %1173 = vset.pattern.permute.xlu1 %v1294_v5  ;;  %1172 = vset.pattern.permute.xlu0 %v1294_v5 }
   0x2   :  { %v1120_v3 = vpack.c.bf16 %v1324_v1, %v52_v0  ;;  %v1335_v4 = vld [vmem:[%s1993_s0 + $0x18] sm:$0xff]  ;;  %1096 = vmatprep.mubr.f32.mxu0 %v52_v0  ;;  %v60_v7 = vld [vmem:[%s1993_s0 + $0x40] sm:$0xff]  ;;  %v1353_v10 = vld [vmem:[%s1993_s0 + $0x28] sm:$0xff] }
   0x3   :  { %v1124_v6 = vpack.c.bf16 %v1335_v4, %v1329_v2  ;;  %v508_v8 = vld [vmem:[%s1994_s1] sm:$0xff]  ;;  %1108 = vmatprep.mubr.f32.mxu1 %v60_v7  ;;  %v509_v11 = vld [vmem:[%s1994_s1 + $0x8] sm:$0xff]  ;;  %v510_v12 = vld [vmem:[%s1994_s1 + $0x10] sm:$0xff] }
   0x4   :  { %1121 = vmatprep.subr.bf16.mxu0 %v1120_v3  ;;  %1152 = vmatprep.subr.bf16.mxu1 %v1120_v3  ;;  %v1348_v9 = vld [vmem:[%s1993_s0 + $0x20] sm:$0xff]  ;;  %v511_v13 = vld [vmem:[%s1994_s1 + $0x18] sm:$0xff] }
   0x5   :  { %1123 = vmatpush3.bf16.xpose.msra.mxu0 %v1120_v3  ;;  %1160 = vmatpush3.bf16.xpose.msra.mxu1 %v1120_v3 }
   0x6   :  { %1125 = vmatprep.subr.bf16.mxu0 %v1124_v6  ;;  %1153 = vmatprep.subr.bf16.mxu1 %v1124_v6 }
   0x7   :  { %526 = vperm.xlu1 %1173, %v508_v8   ;;  %529 = vperm.xlu0 %1172, %v509_v11  }
   0x8   :  { %8 = vsyncpa [#allocation5], 0  ;;  %v1128_v14 = vpack.c.bf16 %v1353_v10, %v1348_v9  ;;  %v512_v15 = vld [vmem:[%s1994_s1 + $0x20] sm:$0xff]  ;;  %v513_v16 = vld [vmem:[%s1994_s1 + $0x28] sm:$0xff]  ;;  %v280_v35 = vlaneseq  ;;  %vm1295_vm4 = vmmov 1  }
   0x9   :  { %v58_v17 = vld [vmem:[%s1993_s0 + $0x30] sm:$0xff]  ;;  %v59_v18 = vld [vmem:[%s1993_s0 + $0x38] sm:$0xff]  ;;  %v516_v22 = vld [vmem:[%s1994_s1 + $0x40] sm:$0xff] }
   0xa   :  { %v514_v19 = vld [vmem:[%s1994_s1 + $0x30] sm:$0xff]  ;;  %v515_v20 = vld [vmem:[%s1994_s1 + $0x38] sm:$0xff]  ;;  %v1132_v21 = vpack.c.bf16 %v59_v18, %v58_v17  ;;  %v517_v23 = vld [vmem:[%s1994_s1 + $0x48] sm:$0xff]  ;;  %v1417_v36 = vand.u32 127, %v280_v35 }
   0xb   :  { %532 = vperm.xlu1 %1173, %v510_v12   ;;  %535 = vperm.xlu0 %1172, %v511_v13   ;;  %v61_v24 = vld [vmem:[%s1993_s0 + $0x48] sm:$0xff]  ;;  %v62_v26 = vld [vmem:[%s1993_s0 + $0x50] sm:$0xff]  ;;  %v63_v27 = vld [vmem:[%s1993_s0 + $0x58] sm:$0xff] }
   0xc   :  { %v1136_v25 = vpack.c.bf16 %v61_v24, %v60_v7  ;;  %v1140_v28 = vpack.c.bf16 %v63_v27, %v62_v26  ;;  %v64_v29 = vld [vmem:[%s1993_s0 + $0x60] sm:$0xff]  ;;  %v65_v30 = vld [vmem:[%s1993_s0 + $0x68] sm:$0xff]  ;;  %v66_v32 = vld [vmem:[%s1993_s0 + $0x70] sm:$0xff]  ;;  %vm315_vm0 = vcmp.lt.s32.totalorder %v1417_v36, 8 }
   0xd   :  { %1127 = vmatpush3.bf16.xpose.msra.mxu0 %v1124_v6  ;;  %1161 = vmatpush3.bf16.xpose.msra.mxu1 %v1124_v6  ;;  %v1144_v31 = vpack.c.bf16 %v65_v30, %v64_v29  ;;  %v67_v33 = vld [vmem:[%s1993_s0 + $0x78] sm:$0xff] }
   0xe   :  { %1129 = vmatprep.subr.bf16.mxu0 %v1128_v14  ;;  %1154 = vmatprep.subr.bf16.mxu1 %v1128_v14  ;;  %v1148_v34 = vpack.c.bf16 %v67_v33, %v66_v32 }
   0xf   :  { %538 = vperm.xlu1 %1173, %v512_v15   ;;  %541 = vperm.xlu0 %1172, %v513_v16  }
  0x13   :  { %544 = vperm.xlu1 %1173, %v514_v19   ;;  %547 = vperm.xlu0 %1172, %v515_v20  }
  0x15   :  { %1131 = vmatpush3.bf16.xpose.msra.mxu0 %v1128_v14  ;;  %1162 = vmatpush3.bf16.xpose.msra.mxu1 %v1128_v14 }
  0x16   :  { %1133 = vmatprep.subr.bf16.mxu0 %v1132_v21  ;;  %1155 = vmatprep.subr.bf16.mxu1 %v1132_v21 }
  0x17   :  { %550 = vperm.xlu1 %1173, %v516_v22   ;;  %553 = vperm.xlu0 %1172, %v517_v23  }
  0x1d   :  { %1135 = vmatpush3.bf16.xpose.msra.mxu0 %v1132_v21  ;;  %1163 = vmatpush3.bf16.xpose.msra.mxu1 %v1132_v21 }
  0x1e   :  { %1137 = vmatprep.subr.bf16.mxu0 %v1136_v25  ;;  %1156 = vmatprep.subr.bf16.mxu1 %v1136_v25 }
  0x25   :  { %1139 = vmatpush3.bf16.xpose.msra.mxu0 %v1136_v25  ;;  %1164 = vmatpush3.bf16.xpose.msra.mxu1 %v1136_v25 }
  0x26   :  { %1141 = vmatprep.subr.bf16.mxu0 %v1140_v28  ;;  %1157 = vmatprep.subr.bf16.mxu1 %v1140_v28 }
  0x2d   :  { %1143 = vmatpush3.bf16.xpose.msra.mxu0 %v1140_v28  ;;  %1165 = vmatpush3.bf16.xpose.msra.mxu1 %v1140_v28 }
  0x2e   :  { %1145 = vmatprep.subr.bf16.mxu0 %v1144_v31  ;;  %1158 = vmatprep.subr.bf16.mxu1 %v1144_v31 }
  0x35   :  { %1147 = vmatpush3.bf16.xpose.msra.mxu0 %v1144_v31  ;;  %1166 = vmatpush3.bf16.xpose.msra.mxu1 %v1144_v31 }
  0x36   :  { %1149 = vmatprep.subr.bf16.mxu0 %v1148_v34  ;;  %1159 = vmatprep.subr.bf16.mxu1 %v1148_v34 }
  0x3d   :  { %1151 = vmatpush3.bf16.xpose.msra.mxu0 %v1148_v34  ;;  %1167 = vmatpush3.bf16.xpose.msra.mxu1 %v1148_v34 }
  0x44   :  { %1097 = vmatmul.mubr.f32.vlgmr.msra.gmra.mrb[0].mxu0 %v1324_v1  ;;  %1109 = vmatmul.mubr.f32.vlgmr.msra.gmra.mrb[0].mxu1 %v61_v24 }
  0x45   :  { %1099 = vmatprep.mubr.f32.mxu0 %v1329_v2  ;;  %1111 = vmatprep.mubr.f32.mxu1 %v62_v26 }
  0x48   :  { %1100 = vmatmul.mubr.f32.gmra.mrb[2].mxu0 %v1335_v4  ;;  %1112 = vmatmul.mubr.f32.gmra.mrb[2].mxu1 %v63_v27 }
  0x49   :  { %1102 = vmatprep.mubr.f32.mxu0 %v1348_v9  ;;  %1114 = vmatprep.mubr.f32.mxu1 %v64_v29 }
  0x4c   :  { %1103 = vmatmul.mubr.f32.gmra.mrb[4].mxu0 %v1353_v10  ;;  %1115 = vmatmul.mubr.f32.gmra.mrb[4].mxu1 %v65_v30 }
  0x4d   :  { %1105 = vmatprep.mubr.f32.mxu0 %v58_v17  ;;  %1117 = vmatprep.mubr.f32.mxu1 %v66_v32  ;;  %v519_v17 = vld [vmem:[%s1994_s1 + $0x58] sm:$0xff] }
  0x50   :  { %1106 = vmatmul.mubr.f32.gmra.mrb[6].mxu0 %v59_v18  ;;  %1118 = vmatmul.mubr.f32.gmra.mrb[6].mxu1 %v67_v33  ;;  %v518_v18 = vld [vmem:[%s1994_s1 + $0x50] sm:$0xff] }
  0x86   :  { %v1506_v23 = vpop.permute.xlu1 %526  ;;  %v1508_v24 = vpop.permute.xlu0 %529 }
  0x8a   :  { %v1510_v25 = vpop.permute.xlu1 %532  ;;  %v1512_v26 = vpop.permute.xlu0 %535 }
  0x8e   :  { %v1514_v27 = vpop.permute.xlu1 %538  ;;  %v1516_v28 = vpop.permute.xlu0 %541 }
  0x92   :  { %v1518_v29 = vpop.permute.xlu1 %544  ;;  %v1520_v30 = vpop.permute.xlu0 %547 }
  0x96   :  { %v1522_v31 = vpop.permute.xlu1 %550  ;;  %v1524_v32 = vpop.permute.xlu0 %553 }
 0x117   :  { %v1098_v37 = vpop.f32.mrb[0].mxu0  ;;  %v1110_v38 = vpop.f32.mrb[0].mxu1 }
 0x118   :  { %v1420_v39 = vmul.f32 10.0, %v1098_v37  ;;  %v1422_v40 = vmul.f32 10.0, %v1110_v38  ;;  %v150_v41 = vpop.f32.mrb[1].mxu0  ;;  %v190_v42 = vpop.f32.mrb[1].mxu1  ;;  %v1527_v37 = vshrl.u32 %v280_v35, 7 }
 0x119   :  { %v1424_v43 = vmul.f32 10.0, %v150_v41  ;;  %v1436_v52 = vmul.f32 10.0, %v190_v42 }
 0x11a   :  { %v357_v44 = vsel %vm315_vm0, %v1422_v40, -1e+30  ;;  %v349_v45 = vsel %vm315_vm0, %v1420_v39, -1e+30  ;;  %v282_v42 = vadd.s32 8, %v1527_v37  ;;  %vm299_vm2 = vcmp.eq.s32.totalorder %v1527_v37, %v1417_v36 }
 0x11b   :  { %382 = vmax.xlane.f32.xlu1 %v357_v44  ;;  %366 = vmax.xlane.f32.xlu0 %v349_v45  ;;  %v1101_v46 = vpop.f32.mrb[2].mxu0  ;;  %v1113_v47 = vpop.f32.mrb[2].mxu1  ;;  %v348_v53 = vsel %vm315_vm0, %v1424_v43, -1e+30  ;;  %v356_v62 = vsel %vm315_vm0, %v1436_v52, -1e+30  ;;  %vm1561_vm7 = vmxor %vm299_vm2, %vm1295_vm4 }
 0x11c   :  { %v1432_v48 = vmul.f32 10.0, %v1101_v46  ;;  %v160_v49 = vpop.f32.mrb[3].mxu0  ;;  %v1434_v50 = vmul.f32 10.0, %v1113_v47  ;;  %v200_v51 = vpop.f32.mrb[3].mxu1  ;;  %vm300_vm1 = vcmp.eq.s32.totalorder %v282_v42, %v1417_v36  ;;  %vm1598_vm11 = vmand %vm315_vm0, %vm1561_vm7 }
 0x11d   :  { %v1447_v60 = vmul.f32 10.0, %v160_v49  ;;  %v1449_v61 = vmul.f32 10.0, %v200_v51  ;;  %v289_v49 = vadd.s32 64, %v1527_v37  ;;  %vm413_vm5 = vmxor %vm300_vm1, %vm1295_vm4 }
 0x11e   :  { %v351_v54 = vsel %vm315_vm0, %v1432_v48, -1e+30  ;;  %v359_v57 = vsel %vm315_vm0, %v1434_v50, -1e+30  ;;  %vm1576_vm9 = vmand %vm315_vm0, %vm413_vm5 }
 0x11f   :  { %364 = vmax.xlane.f32.xlu0 %v348_v53  ;;  %370 = vmax.xlane.f32.xlu1 %v351_v54  ;;  %v1104_v55 = vpop.f32.mrb[4].mxu0  ;;  %v1116_v56 = vpop.f32.mrb[4].mxu1  ;;  %v358_v5 = vsel %vm315_vm0, %v1449_v61, -1e+30  ;;  %v350_v6 = vsel %vm315_vm0, %v1447_v60, -1e+30  ;;  %vm307_vm3 = vcmp.eq.s32.totalorder %v289_v49, %v1417_v36 }
 0x120   :  { %v170_v58 = vpop.f32.mrb[5].mxu0  ;;  %v210_v59 = vpop.f32.mrb[5].mxu1  ;;  %v1454_v1 = vmul.f32 10.0, %v1104_v55  ;;  %v1464_v7 = vmul.f32 10.0, %v1116_v56  ;;  %vm1568_vm8 = vmxor %vm307_vm3, %vm1295_vm4 }
 0x121   :  { %v1456_v2 = vmul.f32 10.0, %v170_v58  ;;  %v1466_v8 = vmul.f32 10.0, %v210_v59  ;;  %vm1609_vm13 = vmand %vm315_vm0, %vm1568_vm8 }
 0x122   :  { %v353_v9 = vsel %vm315_vm0, %v1454_v1, -1e+30  ;;  %v361_v11 = vsel %vm315_vm0, %v1464_v7, -1e+30 }
 0x123   :  { %380 = vmax.xlane.f32.xlu0 %v356_v62  ;;  %386 = vmax.xlane.f32.xlu1 %v359_v57  ;;  %v1107_v63 = vpop.f32.mrb[6].mxu0  ;;  %v1119_v0 = vpop.f32.mrb[6].mxu1  ;;  %v352_v10 = vsel %vm315_vm0, %v1456_v2, -1e+30  ;;  %v360_v12 = vsel %vm315_vm0, %v1466_v8, -1e+30 }
 0x124   :  { %v180_v3 = vpop.f32.mrb[7].mxu0  ;;  %v220_v4 = vpop.f32.mrb[7].mxu1  ;;  %v1480_v13 = vmul.f32 10.0, %v1107_v63  ;;  %v1482_v14 = vmul.f32 10.0, %v1119_v0  ;;  %v284_v57 = vadd.s32 24, %v1527_v37 }
 0x125   :  { %v1496_v19 = vmul.f32 10.0, %v180_v3  ;;  %v1498_v20 = vmul.f32 10.0, %v220_v4  ;;  %v292_v3 = vadd.s32 88, %v1527_v37 }
 0x126   :  { %v355_v15 = vsel %vm315_vm0, %v1480_v13, -1e+30  ;;  %v363_v16 = vsel %vm315_vm0, %v1482_v14, -1e+30  ;;  %vm302_vm12 = vcmp.eq.s32.totalorder %v284_v57, %v1417_v36  ;;  %v293_v57 = vadd.s32 96, %v1527_v37 }
 0x127   :  { %384 = vmax.xlane.f32.xlu0 %v358_v5  ;;  %368 = vmax.xlane.f32.xlu1 %v350_v6  ;;  %v354_v21 = vsel %vm315_vm0, %v1496_v19, -1e+30  ;;  %v362_v22 = vsel %vm315_vm0, %v1498_v20, -1e+30  ;;  %vm310_vm1 = vcmp.eq.s32.totalorder %v292_v3, %v1417_v36  ;;  %vm1633_vm2 = vmxor %vm302_vm12, %vm1295_vm4 }
 0x128   :  { %vm1669_vm8 = vmand %vm315_vm0, %vm1633_vm2 }
 0x12b   :  { %374 = vmax.xlane.f32.xlu1 %v353_v9  ;;  %372 = vmax.xlane.f32.xlu0 %v352_v10 }
 0x12f   :  { %390 = vmax.xlane.f32.xlu1 %v361_v11  ;;  %388 = vmax.xlane.f32.xlu0 %v360_v12  ;;  %v291_v11 = vadd.s32 80, %v1527_v37 }
 0x131   :  { %vm309_vm7 = vcmp.eq.s32.totalorder %v291_v11, %v1417_v36 }
 0x133   :  { %378 = vmax.xlane.f32.xlu1 %v355_v15 }
 0x137   :  { %394 = vmax.xlane.f32.xlu1 %v363_v16 }
 0x145   :  { %559 = vperm.xlu0 %1172, %v519_v17  }
 0x148   :  { %556 = vperm.xlu1 %1173, %v518_v18   ;;  %v1296_v18 = vmov 0.0  }
 0x149   :  { %v1701_v0 = vsel %vm1609_vm13, 1.0, %v1296_v18 }
 0x164   :  { %376 = vmax.xlane.f32.xlu0 %v354_v21  ;;  %v1619_v21 = vsel %vm1576_vm9, 1.0, %v1296_v18 }
 0x168   :  { %392 = vmax.xlane.f32.xlu0 %v362_v22 }
 0x1a8   :  { %v383_v33 = vpop.xlane.xlu1 %382  ;;  %v367_v34 = vpop.xlane.xlu0 %366 }
 0x1a9   :  { %v1530_v38 = vsub.f32 %v1422_v40, %v383_v33  ;;  %v1533_v41 = vsub.f32 %v1420_v39, %v367_v34  ;;  %v290_v39 = vadd.s32 72, %v1527_v37  ;;  %v285_v34 = vadd.s32 32, %v1527_v37 }
 0x1ab   :  { %v659_v44 = vmul.f32 1.442695, %v1533_v41  ;;  %v675_v45 = vmul.f32 1.442695, %v1530_v38  ;;  %vm308_vm6 = vcmp.eq.s32.totalorder %v290_v39, %v1417_v36  ;;  %v294_v39 = vadd.s32 104, %v1527_v37 }
 0x1ac   :  { %v365_v46 = vpop.xlane.xlu0 %364  ;;  %v371_v47 = vpop.xlane.xlu1 %370  ;;  %vm1590_vm10 = vmxor %vm308_vm6, %vm1295_vm4 }
 0x1ad   :  { %v1540_v51 = vsub.f32 %v1424_v43, %v365_v46  ;;  %v1543_v35 = vsub.f32 %v1432_v48, %v371_v47  ;;  %1174 = vpow2.f32 %v659_v44  ;;  %vm437_vm15 = vmand %vm315_vm0, %vm1590_vm10  ;;  %v1640_v44 = vsel %vm1598_vm11, 1.0, %v1296_v18 }
 0x1ae   :  { %1176 = vpow2.f32 %v675_v45  ;;  %v1652_v47 = vsel %vm437_vm15, 1.0, %v1296_v18  ;;  %vm1655_vm6 = vmxor %vm310_vm1, %vm1295_vm4  ;;  %vm312_vm13 = vcmp.eq.s32.totalorder %v294_v39, %v1417_v36  ;;  %vm311_vm15 = vcmp.eq.s32.totalorder %v293_v57, %v1417_v36 }
 0x1af   :  { %v657_v40 = vmul.f32 1.442695, %v1540_v51  ;;  %v663_v53 = vmul.f32 1.442695, %v1543_v35  ;;  %vm1692_vm10 = vmand %vm315_vm0, %vm1655_vm6 }
 0x1b0   :  { %v381_v54 = vpop.xlane.xlu0 %380  ;;  %v387_v55 = vpop.xlane.xlu1 %386  ;;  %vm1706_vm11 = vmxor %vm309_vm7, %vm1295_vm4 }
 0x1b1   :  { %1178 = vpow2.f32 %v657_v40  ;;  %v1553_v43 = vsub.f32 %v1436_v52, %v381_v54  ;;  %v1556_v48 = vsub.f32 %v1434_v50, %v387_v55  ;;  %v283_v50 = vadd.s32 16, %v1527_v37  ;;  %vm1746_vm1 = vmand %vm315_vm0, %vm1706_vm11 }
 0x1b2   :  { %1180 = vpow2.f32 %v663_v53  ;;  %vm1751_vm2 = vmxor %vm312_vm13, %vm1295_vm4  ;;  %v1776_v56 = vsel %vm1746_vm1, 1.0, %v1296_v18 }
 0x1b3   :  { %v673_v58 = vmul.f32 1.442695, %v1553_v43  ;;  %v679_v59 = vmul.f32 1.442695, %v1556_v48  ;;  %vm301_vm14 = vcmp.eq.s32.totalorder %v283_v50, %v1417_v36  ;;  %vm441_vm6 = vmand %vm315_vm0, %vm1751_vm2  ;;  %v288_v50 = vadd.s32 56, %v1527_v37 }
 0x1b4   :  { %v385_v62 = vpop.xlane.xlu0 %384  ;;  %v369_v63 = vpop.xlane.xlu1 %368  ;;  %vm1645_vm3 = vmxor %vm301_vm14, %vm1295_vm4 }
 0x1b5   :  { %1182 = vpow2.f32 %v673_v58  ;;  %v1582_v4 = vsub.f32 %v1449_v61, %v385_v62  ;;  %v1585_v5 = vsub.f32 %v1447_v60, %v369_v63  ;;  %v286_v60 = vadd.s32 40, %v1527_v37  ;;  %vm1721_vm12 = vmand %vm315_vm0, %vm1645_vm3 }
 0x1b6   :  { %1184 = vpow2.f32 %v679_v59  ;;  %v1765_v49 = vsel %vm1721_vm12, 1.0, %v1296_v18  ;;  %vm424_vm3 = vmxor %vm311_vm15, %vm1295_vm4 }
 0x1b7   :  { %v661_v61 = vmul.f32 1.442695, %v1585_v5  ;;  %v1175_v12 = vpop.eup %1174  ;;  %v677_v15 = vmul.f32 1.442695, %v1582_v4  ;;  %vm304_vm5 = vcmp.eq.s32.totalorder %v286_v60, %v1417_v36  ;;  %v1714_v60 = vsel %vm1669_vm8, 1.0, %v1296_v18  ;;  %vm440_vm7 = vmand %vm315_vm0, %vm424_vm3 }
 0x1b8   :  { %v375_v16 = vpop.xlane.xlu1 %374  ;;  %v373_v17 = vpop.xlane.xlu0 %372  ;;  %v690_v33 = vmul.f32 %v1175_v12, %v1619_v21  ;;  %vm1684_vm9 = vmxor %vm304_vm5, %vm1295_vm4  ;;  %vm303_vm8 = vcmp.eq.s32.totalorder %v285_v34, %v1417_v36  ;;  %v520_v34 = vld [vmem:[%s1994_s1 + $0x60] sm:$0xff] }
 0x1b9   :  { %v1627_v22 = vsub.f32 %v1454_v1, %v375_v16  ;;  %v1177_v42 = vpop.eup %1176  ;;  %1186 = vpow2.f32 %v661_v61  ;;  %v1662_v40 = vsub.f32 %v1456_v2, %v373_v17  ;;  %vm1734_vm14 = vmand %vm315_vm0, %vm1684_vm9  ;;  %v1759_v1 = vld [vmem:[%s1995_s2] ss:$0 sm:$0xff] }
 0x1ba   :  { %707 = vadd.xlane.f32.xlu1 %v690_v33  ;;  %1188 = vpow2.f32 %v677_v15  ;;  %v698_v52 = vmul.f32 %v1177_v42, %v1652_v47  ;;  %vm416_vm9 = vmxor %vm303_vm8, %vm1295_vm4  ;;  %v521_v33 = vld [vmem:[%s1994_s1 + $0x68] sm:$0xff]  ;;  %vm578_vm8 = vcmp.eq.s32.totalorder %v1508_v24, %v1759_v1 }
 0x1bb   :  { %v1179_v45 = vpop.eup %1178  ;;  %v667_v46 = vmul.f32 1.442695, %v1627_v22  ;;  %v665_v6 = vmul.f32 1.442695, %v1662_v40  ;;  %vm432_vm11 = vmand %vm315_vm0, %vm416_vm9 }
 0x1bc   :  { %v391_v53 = vpop.xlane.xlu1 %390  ;;  %v389_v54 = vpop.xlane.xlu0 %388  ;;  %v689_v55 = vmul.f32 %v1179_v45, %v1640_v44 }
 0x1bd   :  { %1190 = vpow2.f32 %v667_v46  ;;  %v1675_v58 = vsub.f32 %v1464_v7, %v391_v53  ;;  %v1678_v2 = vsub.f32 %v1466_v8, %v389_v54  ;;  %v1181_v59 = vpop.eup %1180 }
 0x1be   :  { %705 = vadd.xlane.f32.xlu0 %v689_v55  ;;  %723 = vadd.xlane.f32.xlu1 %v698_v52  ;;  %v692_v12 = vmul.f32 %v1181_v59, %v1714_v60  ;;  %v1785_v52 = vsel %vm1734_vm14, 1.0, %v1296_v18 }
 0x1bf   :  { %v1183_v8 = vpop.eup %1182  ;;  %v683_v62 = vmul.f32 1.442695, %v1675_v58  ;;  %v681_v63 = vmul.f32 1.442695, %v1678_v2 }
 0x1c0   :  { %v379_v9 = vpop.xlane.xlu1 %378  ;;  %v697_v61 = vmul.f32 %v1183_v8, %v1701_v0  ;;  %v1185_v16 = vpop.eup %1184 }
 0x1c1   :  { %1192 = vpow2.f32 %v683_v62  ;;  %v1727_v11 = vsub.f32 %v1480_v13, %v379_v9  ;;  %v1010_v13 = vsel %vm1692_vm10, 1.0, %v1296_v18  ;;  %v1796_v62 = vsel %vm441_vm6, 1.0, %v1296_v18 }
 0x1c2   :  { %1194 = vpow2.f32 %v681_v63  ;;  %721 = vadd.xlane.f32.xlu0 %v697_v61  ;;  %711 = vadd.xlane.f32.xlu1 %v692_v12  ;;  %v700_v39 = vmul.f32 %v1185_v16, %v1010_v13  ;;  %v1799_v63 = vsel %vm440_vm7, 1.0, %v1296_v18  ;;  %vm306_vm10 = vcmp.eq.s32.totalorder %v288_v50, %v1417_v36 }
 0x1c3   :  { %v1187_v42 = vpop.eup %1186  ;;  %1196 = vpow2.f32 %v665_v6  ;;  %v671_v45 = vmul.f32 1.442695, %v1727_v11  ;;  %vm419_vm12 = vmxor %vm306_vm10, %vm1295_vm4  ;;  %v1809_v12 = vsel %vm432_vm11, 1.0, %v1296_v18  ;;  %vm581_vm10 = vcmp.eq.s32.totalorder %v1514_v27, %v1759_v1 }
 0x1c4   :  { %v560_v46 = vpop.permute.xlu0 %559  ;;  %v691_v53 = vmul.f32 %v1187_v42, %v1765_v49  ;;  %v1189_v54 = vpop.eup %1188  ;;  %vm435_vm13 = vmand %vm315_vm0, %vm419_vm12  ;;  %v522_v42 = vld [vmem:[%s1994_s1 + $0x70] sm:$0xff]  ;;  %vm582_vm11 = vcmp.eq.s32.totalorder %v1516_v28, %v1759_v1  ;;  %vm583_vm12 = vcmp.eq.s32.totalorder %v1518_v29, %v1759_v1  ;;  %v523_v29 = vld [vmem:[%s1994_s1 + $0x78] sm:$0xff]  ;;  %s1297_s1 = smov [#allocation4]  }
 0x1c5   :  { %vm588_vm5 = vcmp.eq.s32.totalorder %v560_v46, %v1759_v1  ;;  %1198 = vpow2.f32 %v671_v45  ;;  %v699_v8 = vmul.f32 %v1189_v54, %v1776_v56  ;;  %v395_v45 = vpop.xlane.xlu1 %394  ;;  %s991_s22 = sshll.u32 %s1297_s1, 4  ;;  %s992_s22 = int_to_ptr.vmem [resolvable:$true] %s991_s22 }
 0x1c6   :  { %v1027_v55 = vsel %vm588_vm5, 1.0, %v1296_v18  ;;  %727 = vadd.xlane.f32.xlu1 %v700_v39  ;;  %709 = vadd.xlane.f32.xlu0 %v691_v53  ;;  %v1831_v53 = vsub.f32 %v1482_v14, %v395_v45  ;;  %v1020_v45 = vsel %vm581_vm10, 1.0, %v1296_v18  ;;  %s1270_s23 = scalar_lea.vmem %s992_s22, 16  ;;  %s1274_s24 = scalar_lea.vmem %s992_s22, 32 }
 0x1c7   :  { %v1191_v57 = vpop.eup %1190  ;;  %v1791_v59 = vmul.f32 %v1027_v55, %v1010_v13  ;;  %v1815_v13 = vsel %vm435_vm13, 1.0, %v1296_v18  ;;  %vm584_vm13 = vcmp.eq.s32.totalorder %v1520_v30, %v1759_v1  ;;  %p1271_p0 = scmp.ne.s32.totalorder %s992_s22, %s1270_s23  ;;  %p1275_p1 = scmp.lt.s32.totalorder %s992_s22, %s992_s22 }
 0x1c8   :  { %v694_v7 = vmul.f32 %v1191_v57, %v1785_v52  ;;  %v687_v50 = vmul.f32 1.442695, %v1831_v53  ;;  %p1276_p2 = scmp.lt.s32.totalorder %s1274_s24, %s1270_s23 }
 0x1ca   :  { %715 = vadd.xlane.f32.xlu1 %v694_v7  ;;  %725 = vadd.xlane.f32.xlu0 %v699_v8  ;;  %v287_v7 = vadd.s32 48, %v1527_v37  ;;  %p1277_p3 = por %p1276_p2, %p1275_p1 }
 0x1cb   :  { %v1193_v3 = vpop.eup %1192 }
 0x1cc   :  { %v1195_v6 = vpop.eup %1194  ;;  %v702_v9 = vmul.f32 %v1193_v3, %v1796_v62  ;;  %v296_v3 = vadd.s32 120, %v1527_v37  ;;  %vm305_vm14 = vcmp.eq.s32.totalorder %v287_v7, %v1417_v36  ;;  %p1278_p4 = pnand %p1277_p3, %p1271_p0 }
 0x1cd   :  { %v701_v61 = vmul.f32 %v1195_v6, %v1799_v63  ;;  %v1197_v10 = vpop.eup %1196  ;;  %vm418_vm2 = vmxor %vm305_vm14, %vm1295_vm4  ;;  %vm577_vm14 = vcmp.eq.s32.totalorder %v1506_v23, %v1759_v1 }
 0x1ce   :  { %731 = vadd.xlane.f32.xlu1 %v702_v9  ;;  %v693_v15 = vmul.f32 %v1197_v10, %v1809_v12  ;;  %vm314_vm15 = vcmp.eq.s32.totalorder %v296_v3, %v1417_v36  ;;  %vm434_vm6 = vmand %vm315_vm0, %vm418_vm2  ;;  %v1016_v7 = vsel %vm577_vm14, 1.0, %v1296_v18 }
 0x1cf   :  { %729 = vadd.xlane.f32.xlu0 %v701_v61  ;;  %v1199_v16 = vpop.eup %1198  ;;  %vm427_vm3 = vmxor %vm314_vm15, %vm1295_vm4  ;;  %v1017_v61 = vsel %vm578_vm8, 1.0, %v1296_v18  ;;  %vm585_vm15 = vcmp.eq.s32.totalorder %v1522_v31, %v1759_v1  ;;  %v625_v3 = vmul.f32 %v1016_v7, %v1640_v44 }
 0x1d0   :  { %v696_v17 = vmul.f32 %v1199_v16, %v1815_v13  ;;  %vm443_vm7 = vmand %vm315_vm0, %vm427_vm3  ;;  %v626_v16 = vmul.f32 %v1017_v61, %v1619_v21 }
 0x1d1   :  { %v1859_v10 = vsel %vm443_vm7, 1.0, %v1296_v18 }
 0x1d2   :  { %713 = vadd.xlane.f32.xlu1 %v693_v15 }
 0x1d6   :  { %719 = vadd.xlane.f32.xlu1 %v696_v17 }
 0x1e5   :  { %565 = vperm.xlu0 %1172, %v521_v33   ;;  %v1872_v33 = vmul.f32 0.0, %v626_v16 }
 0x1e7   :  { %562 = vperm.xlu1 %1173, %v520_v34  }
 0x1e9   :  { %568 = vperm.xlu0 %1172, %v522_v42  }
 0x1f1   :  { %v377_v46 = vpop.xlane.xlu0 %376 }
 0x1f2   :  { %v1828_v39 = vsub.f32 %v1496_v19, %v377_v46  ;;  %v295_v19 = vadd.s32 112, %v1527_v37  ;;  %v1021_v46 = vsel %vm582_vm11, 1.0, %v1296_v18 }
 0x1f4   :  { %v669_v54 = vmul.f32 1.442695, %v1828_v39  ;;  %vm313_vm1 = vcmp.eq.s32.totalorder %v295_v19, %v1417_v36 }
 0x1f5   :  { %v393_v55 = vpop.xlane.xlu0 %392  ;;  %vm426_vm5 = vmxor %vm313_vm1, %vm1295_vm4  ;;  %vm579_vm4 = vcmp.eq.s32.totalorder %v1510_v25, %v1759_v1  ;;  %vm586_vm1 = vcmp.eq.s32.totalorder %v1524_v32, %v1759_v1 }
 0x1f6   :  { %v1835_v57 = vsub.f32 %v1498_v20, %v393_v55  ;;  %1200 = vpow2.f32 %v669_v54  ;;  %vm442_vm9 = vmand %vm315_vm0, %vm426_vm5  ;;  %v1005_v20 = vsel %vm434_vm6, 1.0, %v1296_v18  ;;  %v1018_v17 = vsel %vm579_vm4, 1.0, %v1296_v18 }
 0x1f7   :  { %1202 = vpow2.f32 %v687_v50  ;;  %v1862_v15 = vsel %vm442_vm9, 1.0, %v1296_v18  ;;  %vm580_vm0 = vcmp.eq.s32.totalorder %v1512_v26, %v1759_v1  ;;  %v627_v34 = vmul.f32 %v1018_v17, %v1765_v49 }
 0x1f8   :  { %v685_v8 = vmul.f32 1.442695, %v1835_v57  ;;  %v1019_v25 = vsel %vm580_vm0, 1.0, %v1296_v18  ;;  %v629_v49 = vmul.f32 %v1020_v45, %v1809_v12  ;;  %v1022_v54 = vsel %vm583_vm12, 1.0, %v1296_v18 }
 0x1f9   :  { %v1879_v42 = vmul.f32 0.0, %v627_v34  ;;  %v628_v21 = vmul.f32 %v1019_v25, %v1714_v60  ;;  %v630_v60 = vmul.f32 %v1021_v46, %v1785_v52  ;;  %v631_v12 = vmul.f32 %v1022_v54, %v1005_v20 }
 0x1fa   :  { %1204 = vpow2.f32 %v685_v8  ;;  %v1893_v27 = vmul.f32 0.0, %v629_v49  ;;  %v1023_v55 = vsel %vm584_vm13, 1.0, %v1296_v18  ;;  %v1024_v8 = vsel %vm585_vm15, 1.0, %v1296_v18 }
 0x1fb   :  { %v1886_v26 = vmul.f32 0.0, %v628_v21  ;;  %v1900_v28 = vmul.f32 0.0, %v630_v60  ;;  %v1907_v52 = vmul.f32 0.0, %v631_v12  ;;  %v632_v50 = vmul.f32 %v1023_v55, %v1815_v13  ;;  %v557_v13 = vpop.permute.xlu1 %556 }
 0x1fc   :  { %v633_v19 = vmul.f32 %v1024_v8, %v1701_v0  ;;  %vm587_vm2 = vcmp.eq.s32.totalorder %v557_v13, %v1759_v1 }
 0x1fd   :  { %v1911_v30 = vmul.f32 0.0, %v632_v50 }
 0x1fe   :  { %v649_v23 = vmul.f32 0.0, %v633_v19 }
 0x200   :  { %v1201_v14 = vpop.eup %1200 }
 0x201   :  { %v1203_v37 = vpop.eup %1202  ;;  %v695_v6 = vmul.f32 %v1201_v14, %v1005_v20  ;;  %v1025_v14 = vsel %vm586_vm1, 1.0, %v1296_v18  ;;  %v1026_v20 = vsel %vm587_vm2, 1.0, %v1296_v18 }
 0x202   :  { %v704_v36 = vmul.f32 %v1203_v37, %v1859_v10  ;;  %v634_v31 = vmul.f32 %v1025_v14, %v1652_v47  ;;  %v652_v47 = vmul.f32 0.0, %v1791_v59 }
 0x204   :  { %v1205_v9 = vpop.eup %1204  ;;  %v650_v37 = vmul.f32 0.0, %v634_v31 }
 0x205   :  { %v703_v24 = vmul.f32 %v1205_v9, %v1862_v15 }
 0x208   :  { %717 = vadd.xlane.f32.xlu0 %v695_v6  ;;  %v635_v6 = vmul.f32 %v1026_v20, %v1776_v56 }
 0x20a   :  { %v1929_v9 = vmul.f32 0.0, %v635_v6 }
 0x20b   :  { %735 = vadd.xlane.f32.xlu1 %v704_v36 }
 0x20c   :  { %733 = vadd.xlane.f32.xlu0 %v703_v24 }
 0x20f   :  { %803 = vadd.xlane.f32.xlu1 %v1872_v33 }
 0x213   :  { %805 = vadd.xlane.f32.xlu1 %v1879_v42 }
 0x217   :  { %807 = vadd.xlane.f32.xlu1 %v1886_v26 }
 0x21b   :  { %809 = vadd.xlane.f32.xlu1 %v1893_v27 }
 0x21f   :  { %811 = vadd.xlane.f32.xlu1 %v1900_v28 }
 0x222   :  { %571 = vperm.xlu0 %1172, %v523_v29  }
 0x223   :  { %813 = vadd.xlane.f32.xlu1 %v1907_v52 }
 0x227   :  { %815 = vadd.xlane.f32.xlu1 %v1911_v30 }
 0x241   :  { %801 = vadd.xlane.f32.xlu0 %v625_v3 }
 0x245   :  { %817 = vadd.xlane.f32.xlu0 %v649_v23 }
 0x247   :  { %v708_v32 = vpop.xlane.xlu1 %707 }
 0x248   :  { %1206 = vlog2.f32 %v708_v32 }
 0x249   :  { %819 = vadd.xlane.f32.xlu0 %v650_v37 }
 0x24b   :  { %v706_v44 = vpop.xlane.xlu0 %705  ;;  %v724_v0 = vpop.xlane.xlu1 %723 }
 0x24c   :  { %1208 = vlog2.f32 %v706_v44 }
 0x24d   :  { %1210 = vlog2.f32 %v724_v0  ;;  %821 = vadd.xlane.f32.xlu0 %v1929_v9 }
 0x24f   :  { %v722_v61 = vpop.xlane.xlu0 %721  ;;  %v712_v36 = vpop.xlane.xlu1 %711 }
 0x250   :  { %1212 = vlog2.f32 %v722_v61 }
 0x251   :  { %1214 = vlog2.f32 %v712_v36  ;;  %823 = vadd.xlane.f32.xlu0 %v652_v47 }
 0x252   :  { %v1207_v24 = vpop.eup %1206 }
 0x253   :  { %v756_v56 = vmul.f32 0.6931472, %v1207_v24  ;;  %v728_v16 = vpop.xlane.xlu1 %727  ;;  %v710_v17 = vpop.xlane.xlu0 %709 }
 0x254   :  { %1216 = vlog2.f32 %v728_v16 }
 0x255   :  { %1218 = vlog2.f32 %v710_v17  ;;  %v786_v25 = vsub.f32 %v1533_v41, %v756_v56 }
 0x256   :  { %v1209_v34 = vpop.eup %1208 }
 0x257   :  { %v1211_v21 = vpop.eup %1210  ;;  %v754_v45 = vmul.f32 0.6931472, %v1209_v34  ;;  %v716_v46 = vpop.xlane.xlu1 %715  ;;  %v866_v60 = vmul.f32 %v786_v25, %v1872_v33 }
 0x258   :  { %v772_v49 = vmul.f32 0.6931472, %v1211_v21  ;;  %1220 = vlog2.f32 %v716_v46  ;;  %v1936_v12 = vpop.xlane.xlu0 %725 }
 0x259   :  { %v785_v59 = vsub.f32 %v1540_v51, %v754_v45  ;;  %883 = vadd.xlane.f32.xlu1 %v866_v60 }
 0x25a   :  { %v1213_v54 = vpop.eup %1212  ;;  %v794_v55 = vsub.f32 %v1530_v38, %v772_v49 }
 0x25b   :  { %v1215_v29 = vpop.eup %1214  ;;  %v770_v50 = vmul.f32 0.6931472, %v1213_v54  ;;  %v865_v7 = vmul.f32 %v785_v59, %v625_v3  ;;  %v732_v41 = vpop.xlane.xlu1 %731 }
 0x25c   :  { %v760_v8 = vmul.f32 0.6931472, %v1215_v29  ;;  %v1939_v13 = vmul.f32 %v794_v55, %v650_v37  ;;  %1222 = vlog2.f32 %v732_v41  ;;  %v730_v6 = vpop.xlane.xlu0 %729 }
 0x25d   :  { %881 = vadd.xlane.f32.xlu0 %v865_v7  ;;  %v793_v33 = vsub.f32 %v1553_v43, %v770_v50 }
 0x25e   :  { %v788_v19 = vsub.f32 %v1543_v35, %v760_v8  ;;  %v1217_v51 = vpop.eup %1216 }
 0x25f   :  { %v1943_v14 = vmul.f32 %v793_v33, %v649_v23  ;;  %v1219_v31 = vpop.eup %1218  ;;  %v776_v20 = vmul.f32 0.6931472, %v1217_v51  ;;  %v714_v38 = vpop.xlane.xlu1 %713 }
 0x260   :  { %v868_v32 = vmul.f32 %v788_v19, %v1886_v26  ;;  %v758_v3 = vmul.f32 0.6931472, %v1219_v31  ;;  %1224 = vlog2.f32 %v714_v38 }
 0x261   :  { %v796_v37 = vsub.f32 %v1556_v48, %v776_v20 }
 0x262   :  { %887 = vadd.xlane.f32.xlu1 %v868_v32  ;;  %v1221_v44 = vpop.eup %1220  ;;  %v787_v0 = vsub.f32 %v1585_v5, %v758_v3 }
 0x263   :  { %v764_v43 = vmul.f32 0.6931472, %v1221_v44  ;;  %v720_v61 = vpop.xlane.xlu1 %719  ;;  %v1948_v36 = vmul.f32 %v796_v37, %v652_v47 }
 0x264   :  { %v566_v35 = vpop.permute.xlu0 %565  ;;  %1226 = vlog2.f32 %v720_v61  ;;  %v867_v23 = vmul.f32 %v787_v0, %v1879_v42 }
 0x265   :  { %vm590_vm3 = vcmp.eq.s32.totalorder %v566_v35, %v1759_v1  ;;  %v790_v24 = vsub.f32 %v1627_v22, %v764_v43  ;;  %1228 = vlog2.f32 %v1936_v12 }
 0x266   :  { %v1029_v26 = vsel %vm590_vm3, 1.0, %v1296_v18  ;;  %v1223_v56 = vpop.eup %1222  ;;  %885 = vadd.xlane.f32.xlu1 %v867_v23 }
 0x267   :  { %v638_v48 = vmul.f32 %v1029_v26, %v1796_v62  ;;  %v780_v16 = vmul.f32 0.6931472, %v1223_v56  ;;  %v563_v5 = vpop.permute.xlu1 %562  ;;  %v870_v34 = vmul.f32 %v790_v24, %v1900_v28 }
 0x268   :  { %v569_v17 = vpop.permute.xlu0 %568  ;;  %vm589_vm5 = vcmp.eq.s32.totalorder %v563_v5, %v1759_v1 }
 0x269   :  { %v654_v47 = vmul.f32 0.0, %v638_v48  ;;  %v1028_v25 = vsel %vm589_vm5, 1.0, %v1296_v18  ;;  %v798_v42 = vsub.f32 %v1675_v58, %v780_v16  ;;  %vm591_vm6 = vcmp.eq.s32.totalorder %v569_v17, %v1759_v1 }
 0x26a   :  { %v1225_v21 = vpop.eup %1224  ;;  %891 = vadd.xlane.f32.xlu1 %v870_v34  ;;  %v637_v22 = vmul.f32 %v1028_v25, %v1799_v63  ;;  %v1030_v46 = vsel %vm591_vm6, 1.0, %v1296_v18 }
 0x26b   :  { %v762_v45 = vmul.f32 0.6931472, %v1225_v21  ;;  %v878_v62 = vmul.f32 %v798_v42, %v654_v47  ;;  %v639_v58 = vmul.f32 %v1030_v46, %v1862_v15 }
 0x26c   :  { %v653_v49 = vmul.f32 0.0, %v637_v22 }
 0x26d   :  { %v789_v28 = vsub.f32 %v1662_v40, %v762_v45  ;;  %v655_v29 = vmul.f32 0.0, %v639_v58 }
 0x26e   :  { %v1227_v60 = vpop.eup %1226  ;;  %825 = vadd.xlane.f32.xlu0 %v653_v49 }
 0x26f   :  { %v768_v59 = vmul.f32 0.6931472, %v1227_v60  ;;  %v869_v54 = vmul.f32 %v789_v28, %v1893_v27  ;;  %v1229_v7 = vpop.eup %1228 }
 0x270   :  { %v774_v33 = vmul.f32 0.6931472, %v1229_v7 }
 0x271   :  { %889 = vadd.xlane.f32.xlu1 %v869_v54  ;;  %v792_v55 = vsub.f32 %v1727_v11, %v768_v59 }
 0x272   :  { %827 = vadd.xlane.f32.xlu0 %v654_v47  ;;  %v795_v20 = vsub.f32 %v1582_v4, %v774_v33 }
 0x273   :  { %v872_v63 = vmul.f32 %v792_v55, %v1911_v30 }
 0x275   :  { %895 = vadd.xlane.f32.xlu1 %v872_v63 }
 0x276   :  { %829 = vadd.xlane.f32.xlu0 %v655_v29 }
 0x295   :  { %v718_v50 = vpop.xlane.xlu0 %717 }
 0x296   :  { %1230 = vlog2.f32 %v718_v50 }
 0x297   :  { %1232 = vlog2.f32 %v730_v6 }
 0x298   :  { %v736_v15 = vpop.xlane.xlu1 %735 }
 0x299   :  { %v734_v40 = vpop.xlane.xlu0 %733 }
 0x29a   :  { %1234 = vlog2.f32 %v734_v40 }
 0x29b   :  { %1236 = vlog2.f32 %v736_v15 }
 0x2a0   :  { %v1231_v27 = vpop.eup %1230 }
 0x2a1   :  { %v766_v8 = vmul.f32 0.6931472, %v1231_v27  ;;  %v572_v41 = vpop.permute.xlu0 %571  ;;  %v1233_v19 = vpop.eup %1232 }
 0x2a2   :  { %vm592_vm7 = vcmp.eq.s32.totalorder %v572_v41, %v1759_v1  ;;  %v778_v38 = vmul.f32 0.6931472, %v1233_v19  ;;  %v875_v1 = vmul.f32 %v795_v20, %v1929_v9 }
 0x2a3   :  { %v1031_v11 = vsel %vm592_vm7, 1.0, %v1296_v18  ;;  %v791_v30 = vsub.f32 %v1828_v39, %v766_v8 }
 0x2a4   :  { %v640_v12 = vmul.f32 %v1031_v11, %v1859_v10  ;;  %v1235_v6 = vpop.eup %1234  ;;  %v797_v18 = vsub.f32 %v1678_v2, %v778_v38 }
 0x2a5   :  { %v871_v51 = vmul.f32 %v791_v30, %v1907_v52  ;;  %v782_v32 = vmul.f32 0.6931472, %v1235_v6  ;;  %v1237_v39 = vpop.eup %1236 }
 0x2a6   :  { %v656_v31 = vmul.f32 0.0, %v640_v12  ;;  %v877_v10 = vmul.f32 %v797_v18, %v653_v49  ;;  %v784_v4 = vmul.f32 0.6931472, %v1237_v39 }
 0x2a7   :  { %893 = vadd.xlane.f32.xlu1 %v871_v51  ;;  %v799_v3 = vsub.f32 %v1835_v57, %v782_v32 }
 0x2a8   :  { %831 = vadd.xlane.f32.xlu0 %v656_v31  ;;  %v800_v37 = vsub.f32 %v1831_v53, %v784_v4 }
 0x2a9   :  { %v879_v52 = vmul.f32 %v799_v3, %v655_v29 }
 0x2aa   :  { %v880_v9 = vmul.f32 %v800_v37, %v656_v31 }
 0x2ab   :  { %897 = vadd.xlane.f32.xlu1 %v1943_v14  ;;  %v804_v14 = vpop.xlane.xlu1 %803 }
 0x2ac   :  { %901 = vadd.xlane.f32.xlu0 %v875_v1  ;;  %vm834_vm9 = vcmp.lt.f32.partialorder %v804_v14, 1e-06 }
 0x2ad   :  { %v850_v24 = vsel %vm834_vm9, 1.0, %v804_v14 }
 0x2af   :  { %899 = vadd.xlane.f32.xlu1 %v1939_v13  ;;  %v806_v44 = vpop.xlane.xlu1 %805 }
 0x2b0   :  { %905 = vadd.xlane.f32.xlu0 %v877_v10  ;;  %vm835_vm4 = vcmp.lt.f32.partialorder %v806_v44, 1e-06 }
 0x2b1   :  { %v851_v56 = vsel %vm835_vm4, 1.0, %v806_v44 }
 0x2b3   :  { %903 = vadd.xlane.f32.xlu1 %v1948_v36  ;;  %v808_v2 = vpop.xlane.xlu1 %807 }
 0x2b4   :  { %909 = vadd.xlane.f32.xlu0 %v879_v52  ;;  %vm836_vm0 = vcmp.lt.f32.partialorder %v808_v2, 1e-06 }
 0x2b5   :  { %v852_v16 = vsel %vm836_vm0, 1.0, %v808_v2 }
 0x2b7   :  { %907 = vadd.xlane.f32.xlu1 %v878_v62  ;;  %v810_v0 = vpop.xlane.xlu1 %809 }
 0x2b8   :  { %vm837_vm10 = vcmp.lt.f32.partialorder %v810_v0, 1e-06 }
 0x2b9   :  { %v853_v17 = vsel %vm837_vm10, 1.0, %v810_v0 }
 0x2bb   :  { %911 = vadd.xlane.f32.xlu1 %v880_v9  ;;  %v812_v43 = vpop.xlane.xlu1 %811 }
 0x2bc   :  { %vm838_vm11 = vcmp.lt.f32.partialorder %v812_v43, 1e-06 }
 0x2bd   :  { %v854_v21 = vsel %vm838_vm11, 1.0, %v812_v43 }
 0x2bf   :  { %v814_v57 = vpop.xlane.xlu1 %813 }
 0x2c0   :  { %vm839_vm12 = vcmp.lt.f32.partialorder %v814_v57, 1e-06 }
 0x2c1   :  { %v855_v60 = vsel %vm839_vm12, 1.0, %v814_v57 }
 0x2c3   :  { %v816_v13 = vpop.xlane.xlu1 %815 }
 0x2c4   :  { %vm840_vm13 = vcmp.lt.f32.partialorder %v816_v13, 1e-06 }
 0x2c5   :  { %v856_v59 = vsel %vm840_vm13, 1.0, %v816_v13 }
 0x2ce   :  { %v802_v61 = vpop.xlane.xlu0 %801 }
 0x2cf   :  { %vm833_vm8 = vcmp.lt.f32.partialorder %v802_v61, 1e-06 }
 0x2d0   :  { %v849_v26 = vsel %vm833_vm8, 1.0, %v802_v61  ;;  %vm983_vm8 = vcmask 0  }
 0x2d1   :  { %1238 = vrcp.f32 %v849_v26 }
 0x2d2   :  { %v818_v35 = vpop.xlane.xlu0 %817  ;;  %1240 = vrcp.f32 %v850_v24 }
 0x2d3   :  { %1242 = vrcp.f32 %v851_v56  ;;  %vm841_vm14 = vcmp.lt.f32.partialorder %v818_v35, 1e-06 }
 0x2d4   :  { %1244 = vrcp.f32 %v852_v16  ;;  %v857_v40 = vsel %vm841_vm14, 1.0, %v818_v35 }
 0x2d5   :  { %1246 = vrcp.f32 %v853_v17 }
 0x2d6   :  { %v820_v23 = vpop.xlane.xlu0 %819  ;;  %1248 = vrcp.f32 %v854_v21 }
 0x2d7   :  { %1250 = vrcp.f32 %v855_v60  ;;  %vm842_vm15 = vcmp.lt.f32.partialorder %v820_v23, 1e-06 }
 0x2d8   :  { %1252 = vrcp.f32 %v856_v59  ;;  %v858_v33 = vsel %vm842_vm15, 1.0, %v820_v23 }
 0x2d9   :  { %1254 = vrcp.f32 %v857_v40 }
 0x2da   :  { %v822_v53 = vpop.xlane.xlu0 %821  ;;  %1256 = vrcp.f32 %v858_v33 }
 0x2db   :  { %v1239_v25 = vpop.eup %1238  ;;  %vm843_vm1 = vcmp.lt.f32.partialorder %v822_v53, 1e-06 }
 0x2dc   :  { %v1241_v42 = vpop.eup %1240  ;;  %v859_v11 = vsel %vm843_vm1, 1.0, %v822_v53 }
 0x2dd   :  { %v1243_v45 = vpop.eup %1242  ;;  %1258 = vrcp.f32 %v859_v11 }
 0x2de   :  { %v824_v5 = vpop.xlane.xlu0 %823  ;;  %v1245_v55 = vpop.eup %1244 }
 0x2df   :  { %v1247_v50 = vpop.eup %1246  ;;  %vm844_vm2 = vcmp.lt.f32.partialorder %v824_v5, 1e-06 }
 0x2e0   :  { %v1249_v19 = vpop.eup %1248  ;;  %v860_v38 = vsel %vm844_vm2, 1.0, %v824_v5 }
 0x2e1   :  { %v1251_v32 = vpop.eup %1250  ;;  %1260 = vrcp.f32 %v860_v38 }
 0x2e2   :  { %v1253_v39 = vpop.eup %1252 }
 0x2e3   :  { %v1255_v0 = vpop.eup %1254 }
 0x2e4   :  { %v1257_v23 = vpop.eup %1256 }
 0x2e6   :  { %v884_v36 = vpop.xlane.xlu1 %883 }
 0x2e7   :  { %v916_v49 = vmul.f32 %v1241_v42, %v884_v36  ;;  %v1259_v53 = vpop.eup %1258 }
 0x2e9   :  { %v946_v63 = vmul.f32 -1.4285715, %v916_v49 }
 0x2ea   :  { %v882_v47 = vpop.xlane.xlu0 %881 }
 0x2eb   :  { %v914_v22 = vmul.f32 %v1239_v25, %v882_v47  ;;  %v1261_v17 = vpop.eup %1260 }
 0x2ed   :  { %v945_v54 = vmul.f32 -1.4285715, %v914_v22 }
 0x2ef   :  { %v888_v48 = vpop.xlane.xlu1 %887  ;;  %v961_v7 = vadd.f32 %v946_v63, %v945_v54 }
 0x2f0   :  { %v920_v27 = vmul.f32 %v1245_v55, %v888_v48 }
 0x2f2   :  { %v948_v30 = vmul.f32 -1.4285715, %v920_v27 }
 0x2f3   :  { %v886_v34 = vpop.xlane.xlu1 %885 }
 0x2f4   :  { %v918_v46 = vmul.f32 %v1243_v45, %v886_v34 }
 0x2f6   :  { %v947_v29 = vmul.f32 -1.4285715, %v918_v46 }
 0x2f7   :  { %v892_v62 = vpop.xlane.xlu1 %891 }
 0x2f8   :  { %v962_v41 = vadd.f32 %v961_v7, %v947_v29  ;;  %v924_v31 = vmul.f32 %v1249_v19, %v892_v62 }
 0x2fa   :  { %v963_v20 = vadd.f32 %v962_v41, %v948_v30  ;;  %v950_v3 = vmul.f32 -1.4285715, %v924_v31 }
 0x2fb   :  { %v826_v28 = vpop.xlane.xlu0 %825 }
 0x2fc   :  { %vm845_vm3 = vcmp.lt.f32.partialorder %v826_v28, 1e-06 }
 0x2fd   :  { %v861_v1 = vsel %vm845_vm3, 1.0, %v826_v28 }
 0x2fe   :  { %v890_v58 = vpop.xlane.xlu1 %889  ;;  %1262 = vrcp.f32 %v861_v1 }
 0x2ff   :  { %v922_v8 = vmul.f32 %v1247_v50, %v890_v58  ;;  %v828_v15 = vpop.xlane.xlu0 %827 }
 0x300   :  { %vm846_vm5 = vcmp.lt.f32.partialorder %v828_v15, 1e-06 }
 0x301   :  { %v949_v12 = vmul.f32 -1.4285715, %v922_v8  ;;  %v862_v9 = vsel %vm846_vm5, 1.0, %v828_v15 }
 0x302   :  { %v896_v51 = vpop.xlane.xlu1 %895  ;;  %1264 = vrcp.f32 %v862_v9 }
 0x303   :  { %v830_v6 = vpop.xlane.xlu0 %829  ;;  %v964_v18 = vadd.f32 %v963_v20, %v949_v12  ;;  %v928_v4 = vmul.f32 %v1253_v39, %v896_v51 }
 0x304   :  { %vm847_vm6 = vcmp.lt.f32.partialorder %v830_v6, 1e-06 }
 0x305   :  { %v863_v14 = vsel %vm847_vm6, 1.0, %v830_v6  ;;  %v965_v2 = vadd.f32 %v964_v18, %v950_v3  ;;  %v952_v61 = vmul.f32 -1.4285715, %v928_v4 }
 0x306   :  { %1266 = vrcp.f32 %v863_v14 }
 0x308   :  { %v1263_v25 = vpop.eup %1262 }
 0x30c   :  { %v1265_v46 = vpop.eup %1264 }
 0x310   :  { %v1267_v59 = vpop.eup %1266 }
 0x334   :  { %v894_v10 = vpop.xlane.xlu1 %893 }
 0x335   :  { %v926_v52 = vmul.f32 %v1251_v32, %v894_v10  ;;  %v832_v37 = vpop.xlane.xlu0 %831 }
 0x336   :  { %vm848_vm7 = vcmp.lt.f32.partialorder %v832_v37, 1e-06 }
 0x337   :  { %v951_v44 = vmul.f32 -1.4285715, %v926_v52  ;;  %v864_v36 = vsel %vm848_vm7, 1.0, %v832_v37 }
 0x338   :  { %v898_v43 = vpop.xlane.xlu1 %897  ;;  %1268 = vrcp.f32 %v864_v36 }
 0x339   :  { %v966_v57 = vadd.f32 %v965_v2, %v951_v44  ;;  %v930_v35 = vmul.f32 %v1255_v0, %v898_v43  ;;  %v902_v13 = vpop.xlane.xlu0 %901 }
 0x33a   :  { %v934_v48 = vmul.f32 %v1259_v53, %v902_v13 }
 0x33b   :  { %v953_v26 = vmul.f32 -1.4285715, %v930_v35  ;;  %v967_v24 = vadd.f32 %v966_v57, %v952_v61 }
 0x33c   :  { %v900_v56 = vpop.xlane.xlu1 %899  ;;  %v955_v21 = vmul.f32 -1.4285715, %v934_v48 }
 0x33d   :  { %v932_v16 = vmul.f32 %v1257_v23, %v900_v56  ;;  %v906_v5 = vpop.xlane.xlu0 %905  ;;  %v968_v34 = vadd.f32 %v967_v24, %v953_v26 }
 0x33e   :  { %v938_v45 = vmul.f32 %v1263_v25, %v906_v5 }
 0x33f   :  { %v954_v47 = vmul.f32 -1.4285715, %v932_v16 }
 0x340   :  { %v904_v42 = vpop.xlane.xlu1 %903  ;;  %v957_v58 = vmul.f32 -1.4285715, %v938_v45 }
 0x341   :  { %v969_v22 = vadd.f32 %v968_v34, %v954_v47  ;;  %v936_v62 = vmul.f32 %v1261_v17, %v904_v42  ;;  %v910_v49 = vpop.xlane.xlu0 %909 }
 0x342   :  { %v942_v63 = vmul.f32 %v1267_v59, %v910_v49  ;;  %v1269_v7 = vpop.eup %1268 }
 0x343   :  { %v956_v28 = vmul.f32 -1.4285715, %v936_v62  ;;  %v970_v60 = vadd.f32 %v969_v22, %v955_v21 }
 0x344   :  { %v908_v54 = vpop.xlane.xlu1 %907  ;;  %v959_v8 = vmul.f32 -1.4285715, %v942_v63 }
 0x345   :  { %v971_v55 = vadd.f32 %v970_v60, %v956_v28  ;;  %v940_v29 = vmul.f32 %v1265_v46, %v908_v54 }
 0x347   :  { %v958_v50 = vmul.f32 -1.4285715, %v940_v29  ;;  %v972_v40 = vadd.f32 %v971_v55, %v957_v58 }
 0x348   :  { %v912_v27 = vpop.xlane.xlu1 %911 }
 0x349   :  { %v973_v15 = vadd.f32 %v972_v40, %v958_v50  ;;  %v944_v41 = vmul.f32 %v1269_v7, %v912_v27 }
 0x34b   :  { %v960_v33 = vmul.f32 -1.4285715, %v944_v41  ;;  %v974_v11 = vadd.f32 %v973_v15, %v959_v8 }
 0x34d   :  { %v975_v30 = vadd.f32 %v974_v11, %v960_v33 }
 0x34f   :  { %v976_v12 = vrot.slane %v975_v30, 4 }
 0x351   :  { %v977_v19 = vadd.f32 %v976_v12, %v975_v30 }
 0x353   :  { %v978_v51 = vrot.slane %v977_v19, 2 }
 0x355   :  { %v979_v31 = vadd.f32 %v978_v51, %v977_v19 }
 0x357   :  { %v980_v20 = vrot.slane %v979_v31, 1 }
 0x359   :  { %v981_v6 = vadd.f32 %v980_v20, %v979_v31 }
 0x35b   :  { %v982_v38 = vmul.f32 0.125, %v981_v6 }
 0x35d   :  { %984 = vst.msk [vmem:[#allocation4] sm:$0x1] %vm983_vm8, %v982_v38 }
 0x35e   :  { %1281 = shalt.err (!%p1278_p4)
}
 0x35f   :  { %s1282_s27 = scalar_lea.hbm %s1996_s3, 16 }
 0x360   :  { %p1283_p5 = scmp.ne.s32.totalorder %s1996_s3, %s1282_s27  ;;  %p1286_p6 = scmp.lt.u32.totalorder %s1282_s27, %s1996_s3 }
 0x362   :  { %p1288_p7 = pnand %p1286_p6, %p1283_p5 }
 0x364   :  { %1291 = shalt.err (!%p1288_p7)
}
 0x365   :  { %994 = dma.vmem_to_hbm [thread:$0]  %s992_s22, 16, %s1996_s3, [#allocation5]  }
 0x366   :  { %1292 = dma.done.wait [#allocation5], 16  }
 0x367   :  { %1293 = vsyncadd [#allocation5], 4294967280 }
 0x368   :  { %998 = vsyncpa [#allocation5], 1 }

</bundles_post_ra>
